<compile_context>
chip_gen: v7x
topology: tpu7x:2x2x1
jax: 0.10.0
libtpu: 0.0.40
codegen_flags: <defaults>
</compile_context>

<pallas_src>
import functools

import jax
import jax.numpy as jnp
from jax import lax
from jax.experimental import pallas as pl
from jax.experimental.pallas import tpu as pltpu

LN_EPS = 1e-5  # nn.LayerNorm default


def _encoder_kernel(x_ref, w_ref, bias_ref, g2_ref, b2_ref, cls_ref, pos_ref, o_ref):
    # x_ref: (1, TM, patch_dim) bf16 tile of rows for one batch element.
    # Row 0 of the whole sequence is a zero pad; it is replaced by the cls token below.
    x = x_ref[0].astype(jnp.float32)                         # (TM, patch_dim)

    # LayerNorm(patch_dim) -- two-pass variance (matches nn.LayerNorm; robust with bf16 x).
    # The affine (g1, b1) has been folded into W'/bias' at param-prep time.
    mu = jnp.mean(x, axis=-1, keepdims=True)
    xc = x - mu
    var = jnp.mean(xc * xc, axis=-1, keepdims=True)
    xn = xc * lax.rsqrt(var + LN_EPS)                        # (TM, patch_dim)

    # Linear(patch_dim, dim) -- bf16 MXU operands, f32 accumulation.
    y = jnp.dot(xn.astype(jnp.bfloat16), w_ref[...],
                preferred_element_type=jnp.float32)
    y = y + bias_ref[...]                                    # (TM, dim)

    # LayerNorm(dim) -- two-pass.
    mu2 = jnp.mean(y, axis=-1, keepdims=True)
    yc = y - mu2
    var2 = jnp.mean(yc * yc, axis=-1, keepdims=True)
    yn = yc * lax.rsqrt(var2 + LN_EPS) * g2_ref[...] + b2_ref[...]   # (TM, dim)

    # Global row 0 (first seq tile, local row 0) is the cls token; pos[0] is added below
    # together with all the other rows (pos tile row 0 == pos_embedding[0]).
    row_ids = lax.broadcasted_iota(jnp.int32, (yn.shape[0], 1), 0)
    is_cls = jnp.logical_and(pl.program_id(0) == 0, row_ids == 0)
    yn = jnp.where(is_cls, cls_ref[...], yn)

    o_ref[0] = (yn + pos_ref[...]).astype(o_ref.dtype)


def _patchify(img, p1, p2):
    # einops 'b c (h p1) (w p2) -> b (h w) (p1 p2 c)'; single materializing transpose.
    b, c, H, W = img.shape
    h, w = H // p1, W // p2
    x = img.reshape(b, c, h, p1, w, p2)
    x = jnp.transpose(x, (0, 2, 4, 3, 5, 1))                 # (b, h, w, p1, p2, c)
    return x.reshape(b, h * w, p1 * p2 * c)


def _choose_row_tile(rows, batch):
    """Pick the row tile. rows = n + 1 (cls row included)."""
    if rows <= 8:
        return rows                         # single full-extent tile (no (8,) constraint)
    max_tile = 512                          # amortizes per-step overhead; fits VMEM budget
    if rows <= max_tile:
        if batch >= 2:
            return rows                     # batch axis already provides >=2 parallel steps
        # batch == 1: split into >= 2 multiple-of-8 tiles so both v7x TCs get grid work.
        tm = ((-(-rows // 2)) + 7) // 8 * 8
        return min(tm, rows)
    # Long sequences: largest multiple-of-8 divisor <= 512 (avoids wasted partial tiles).
    start = min(max_tile, (rows // 8) * 8)
    for cand in range(start, 7, -8):
        if rows % cand == 0:
            return cand
    return 256                              # fallback: multiple of 8 and 128


def _vmem_budget(tm, patch_dim, dim):
    """Explicit VMEM budget from the double-buffered tile sizes (safe on v7x's 64 MiB)."""
    x_tile = tm * patch_dim * 2             # bf16 input tile
    out_tile = tm * dim * 4                 # f32 output tile
    pos_tile = tm * dim * 4
    w_bytes = patch_dim * dim * 2           # bf16 weight
    vecs = 4 * dim * 4
    need = 2 * (x_tile + out_tile + pos_tile + w_bytes + vecs)   # 2x double-buffer reservation
    return int(min(max(2 * need + (4 << 20), 16 << 20), 56 << 20))


def prepare_params(params):
    """One-time (outside jit) param prep: fold LN1 affine into W/bias, store W as bf16."""
    g1 = params["ln1_g"].astype(jnp.float32)
    b1 = params["ln1_b"].astype(jnp.float32)
    w = params["w"].astype(jnp.float32)
    b = params["b"].astype(jnp.float32)
    dim = w.shape[1]
    return {
        "w": (g1[:, None] * w).astype(jnp.bfloat16),          # W' = diag(g1) @ W
        "bias": (b + b1 @ w).reshape(1, dim),                  # b' = b + b1 @ W
        "ln2_g": params["ln2_g"].reshape(1, dim).astype(jnp.float32),
        "ln2_b": params["ln2_b"].reshape(1, dim).astype(jnp.float32),
        "pos": params["pos_embedding"][0].astype(jnp.float32),  # (n+1, dim)
        "cls": params["cls_token"].reshape(1, dim).astype(jnp.float32),
    }


@functools.partial(jax.jit, static_argnames=("patch_height", "patch_width"))
def encoder_forward(img, prepped, patch_height, patch_width):
    """img: (b, c, H, W) float32 NCHW.  prepped: output of prepare_params.
    Returns (b, n+1, dim) float32 (cls row at index 0)."""
    patch_dim, dim = prepped["w"].shape

    # Patchify at bf16 (halves the materialized intermediate + the kernel's x read),
    # then pad one leading zero row so the kernel emits the full (b, n+1, dim) output.
    x = _patchify(img.astype(jnp.bfloat16), patch_height, patch_width)  # (b, n, patch_dim)
    b, n, _ = x.shape
    x = jnp.pad(x, ((0, 0), (1, 0), (0, 0)))                            # (b, n+1, patch_dim)
    rows = n + 1

    tm = _choose_row_tile(rows, b)
    num_seq_tiles = -(-rows // tm)

    # NOTE: for very large weights, pipeline_mode=pl.Buffered(1) on the constant operands
    # would halve their double-buffer reservation; not needed at these sizes.
    # NOTE: dim should be a multiple of 128 for lane-dense (unmasked) output stores.
    out = pl.pallas_call(
        _encoder_kernel,
        out_shape=jax.ShapeDtypeStruct((b, rows, dim), jnp.float32),
        grid_spec=pltpu.PrefetchScalarGridSpec(
            num_scalar_prefetch=0,
            grid=(num_seq_tiles, b),            # batch innermost: pos/W tiles stay resident
            in_specs=[
                pl.BlockSpec((1, tm, patch_dim), lambda it, ib: (ib, it, 0)),  # x tile
                pl.BlockSpec((patch_dim, dim), lambda it, ib: (0, 0)),         # W' (bf16)
                pl.BlockSpec((1, dim), lambda it, ib: (0, 0)),                 # bias'
                pl.BlockSpec((1, dim), lambda it, ib: (0, 0)),                 # ln2 gamma
                pl.BlockSpec((1, dim), lambda it, ib: (0, 0)),                 # ln2 beta
                pl.BlockSpec((1, dim), lambda it, ib: (0, 0)),                 # cls token
                pl.BlockSpec((tm, dim), lambda it, ib: (it, 0)),               # pos tile
            ],
            out_specs=pl.BlockSpec((1, tm, dim), lambda it, ib: (ib, it, 0)),
        ),
        compiler_params=pltpu.CompilerParams(
            dimension_semantics=("parallel", "parallel"),
            vmem_limit_bytes=_vmem_budget(tm, patch_dim, dim)),
    )(x, prepped["w"], prepped["bias"], prepped["ln2_g"], prepped["ln2_b"],
      prepped["cls"], prepped["pos"])

    # TODO(synk): nn.Dropout(emb_dropout) is identity at inference time; not applied.
    return out


def init_params(key, patch_dim, dim, num_patches):
    k1, k2, k3, k4 = jax.random.split(key, 4)
    return {
        "ln1_g": jnp.ones((patch_dim,), jnp.float32),
        "ln1_b": jnp.zeros((patch_dim,), jnp.float32),
        "w": jax.random.normal(k1, (patch_dim, dim), jnp.float32)
             * (1.0 / jnp.sqrt(patch_dim)),
        "b": jax.random.normal(k2, (dim,), jnp.float32) * 0.02,
        "ln2_g": jnp.ones((dim,), jnp.float32),
        "ln2_b": jnp.zeros((dim,), jnp.float32),
        "pos_embedding": jax.random.normal(k3, (1, num_patches + 1, dim), jnp.float32),
        "cls_token": jax.random.normal(k4, (1, 1, dim), jnp.float32),
    }


def _reference(img, params):
    """Pure-JAX f32 reference matching the PyTorch forward."""
    x = _patchify(img, P1, P2)
    mu = x.mean(-1, keepdims=True)
    var = ((x - mu) ** 2).mean(-1, keepdims=True)
    xn = (x - mu) / jnp.sqrt(var + LN_EPS) * params["ln1_g"] + params["ln1_b"]
    y = xn @ params["w"] + params["b"]
    mu2 = y.mean(-1, keepdims=True)
    var2 = ((y - mu2) ** 2).mean(-1, keepdims=True)
    yn = (y - mu2) / jnp.sqrt(var2 + LN_EPS) * params["ln2_g"] + params["ln2_b"]
    b = img.shape[0]
    cls = jnp.broadcast_to(params["cls_token"], (b, 1, yn.shape[-1]))
    return jnp.concatenate([cls, yn], axis=1) + params["pos_embedding"]


if __name__ == "__main__":
    # Small, consistent shapes: batch=2, channels=4, spatial=16x16, patch 8x8, dim=128
    # (dim kept at 128 so the output lane dimension is dense / unmasked stores).
    B, C, H, W = 2, 4, 16, 16
    P1, P2 = 8, 8
    PATCH_DIM = P1 * P2 * C              # 256
    DIM = 128
    NUM_PATCHES = (H // P1) * (W // P2)  # 4

    key = jax.random.PRNGKey(0)
    k_img, k_par = jax.random.split(key)
    img = jax.random.normal(k_img, (B, C, H, W), jnp.float32)
    params = init_params(k_par, PATCH_DIM, DIM, NUM_PATCHES)
    prepped = prepare_params(params)

    out = encoder_forward(img, prepped, P1, P2)
    jax.block_until_ready(out)
    assert out.shape == (B, NUM_PATCHES + 1, DIM), out.shape

    ref = _reference(img, params)
    max_err = float(jnp.max(jnp.abs(out - ref)))
    assert max_err < 0.1, f"max abs error {max_err}"
    print("KERNEL_OK")
</pallas_src>

<mosaic_0001>
module attributes {stable_mosaic.version = 11 : i64} {
  func.func @_encoder_kernel(%arg0: i32, %arg1: i32, %arg2: memref<1x5x256xbf16, #tpu.memory_space<vmem>>, %arg3: memref<256x128xbf16, #tpu.memory_space<vmem>>, %arg4: memref<1x128xf32, #tpu.memory_space<vmem>>, %arg5: memref<1x128xf32, #tpu.memory_space<vmem>>, %arg6: memref<1x128xf32, #tpu.memory_space<vmem>>, %arg7: memref<1x128xf32, #tpu.memory_space<vmem>>, %arg8: memref<5x128xf32, #tpu.memory_space<vmem>>, %arg9: memref<1x5x128xf32, #tpu.memory_space<vmem>>) attributes {dimension_semantics = [#tpu.dimension_semantics<parallel>, #tpu.dimension_semantics<parallel>], iteration_bounds = array<i64: 1, 2>, scalar_prefetch = 0 : i64, scratch_operands = 0 : i64, tpu.core_type = #tpu.core_type<tc>, window_params = [{transform_indices = @transform_0, window_bounds = array<i64: 1, 5, 256>}, {pipeline_mode = #tpu.pipeline_mode<synchronous>, transform_indices = @transform_1, window_bounds = array<i64: 256, 128>}, {pipeline_mode = #tpu.pipeline_mode<synchronous>, transform_indices = @transform_2, window_bounds = array<i64: 1, 128>}, {pipeline_mode = #tpu.pipeline_mode<synchronous>, transform_indices = @transform_3, window_bounds = array<i64: 1, 128>}, {pipeline_mode = #tpu.pipeline_mode<synchronous>, transform_indices = @transform_4, window_bounds = array<i64: 1, 128>}, {pipeline_mode = #tpu.pipeline_mode<synchronous>, transform_indices = @transform_5, window_bounds = array<i64: 1, 128>}, {transform_indices = @transform_6, window_bounds = array<i64: 5, 128>}, {transform_indices = @transform_7, window_bounds = array<i64: 1, 5, 128>}]} {
    %c0 = arith.constant 0 : index
    %c0_0 = arith.constant 0 : index
    %c0_1 = arith.constant 0 : index
    %0 = vector.load %arg2[%c0, %c0_0, %c0_1] : memref<1x5x256xbf16, #tpu.memory_space<vmem>>, vector<1x5x256xbf16>
    %1 = vector.shape_cast %0 : vector<1x5x256xbf16> to vector<5x256xbf16>
    %2 = arith.extf %1 : vector<5x256xbf16> to vector<5x256xf32>
    %cst = arith.constant dense<0.000000e+00> : vector<5xf32>
    %3 = vector.multi_reduction <add>, %2, %cst [1] : vector<5x256xf32> to vector<5xf32>
    %4 = vector.shape_cast %3 : vector<5xf32> to vector<5x1xf32>
    %cst_2 = arith.constant 2.560000e+02 : f32
    %5 = vector.broadcast %cst_2 : f32 to vector<5x1xf32>
    %6 = arith.divf %4, %5 : vector<5x1xf32>
    %7 = vector.broadcast %6 : vector<5x1xf32> to vector<5x256xf32>
    %8 = arith.subf %2, %7 : vector<5x256xf32>
    %9 = arith.mulf %8, %8 : vector<5x256xf32>
    %cst_3 = arith.constant dense<0.000000e+00> : vector<5xf32>
    %10 = vector.multi_reduction <add>, %9, %cst_3 [1] : vector<5x256xf32> to vector<5xf32>
    %11 = vector.shape_cast %10 : vector<5xf32> to vector<5x1xf32>
    %cst_4 = arith.constant 2.560000e+02 : f32
    %12 = vector.broadcast %cst_4 : f32 to vector<5x1xf32>
    %13 = arith.divf %11, %12 : vector<5x1xf32>
    %cst_5 = arith.constant 9.99999974E-6 : f32
    %14 = vector.broadcast %cst_5 : f32 to vector<5x1xf32>
    %15 = arith.addf %13, %14 : vector<5x1xf32>
    %16 = math.rsqrt %15 : vector<5x1xf32>
    %17 = vector.broadcast %16 : vector<5x1xf32> to vector<5x256xf32>
    %18 = arith.mulf %8, %17 : vector<5x256xf32>
    %19 = arith.truncf %18 : vector<5x256xf32> to vector<5x256xbf16>
    %c0_6 = arith.constant 0 : index
    %c0_7 = arith.constant 0 : index
    %20 = vector.load %arg3[%c0_6, %c0_7] : memref<256x128xbf16, #tpu.memory_space<vmem>>, vector<256x128xbf16>
    %cst_8 = arith.constant dense<0.000000e+00> : vector<5x128xf32>
    %21 = tpu.matmul %19, %20, %cst_8 {dimension_numbers = #tpu.dot_dimension_numbers<[1], [0], [0], [1], [0, 0, 1, 1], [], []>} : vector<5x256xbf16>, vector<256x128xbf16>, vector<5x128xf32> -> vector<5x128xf32>
    %c0_9 = arith.constant 0 : index
    %c0_10 = arith.constant 0 : index
    %22 = vector.load %arg4[%c0_9, %c0_10] : memref<1x128xf32, #tpu.memory_space<vmem>>, vector<1x128xf32>
    %23 = vector.broadcast %22 : vector<1x128xf32> to vector<5x128xf32>
    %24 = arith.addf %21, %23 : vector<5x128xf32>
    %cst_11 = arith.constant dense<0.000000e+00> : vector<5xf32>
    %25 = vector.multi_reduction <add>, %24, %cst_11 [1] : vector<5x128xf32> to vector<5xf32>
    %26 = vector.shape_cast %25 : vector<5xf32> to vector<5x1xf32>
    %cst_12 = arith.constant 1.280000e+02 : f32
    %27 = vector.broadcast %cst_12 : f32 to vector<5x1xf32>
    %28 = arith.divf %26, %27 : vector<5x1xf32>
    %29 = vector.broadcast %28 : vector<5x1xf32> to vector<5x128xf32>
    %30 = arith.subf %24, %29 : vector<5x128xf32>
    %31 = arith.mulf %30, %30 : vector<5x128xf32>
    %cst_13 = arith.constant dense<0.000000e+00> : vector<5xf32>
    %32 = vector.multi_reduction <add>, %31, %cst_13 [1] : vector<5x128xf32> to vector<5xf32>
    %33 = vector.shape_cast %32 : vector<5xf32> to vector<5x1xf32>
    %cst_14 = arith.constant 1.280000e+02 : f32
    %34 = vector.broadcast %cst_14 : f32 to vector<5x1xf32>
    %35 = arith.divf %33, %34 : vector<5x1xf32>
    %cst_15 = arith.constant 9.99999974E-6 : f32
    %36 = vector.broadcast %cst_15 : f32 to vector<5x1xf32>
    %37 = arith.addf %35, %36 : vector<5x1xf32>
    %38 = math.rsqrt %37 : vector<5x1xf32>
    %39 = vector.broadcast %38 : vector<5x1xf32> to vector<5x128xf32>
    %40 = arith.mulf %30, %39 : vector<5x128xf32>
    %c0_16 = arith.constant 0 : index
    %c0_17 = arith.constant 0 : index
    %41 = vector.load %arg5[%c0_16, %c0_17] : memref<1x128xf32, #tpu.memory_space<vmem>>, vector<1x128xf32>
    %42 = vector.broadcast %41 : vector<1x128xf32> to vector<5x128xf32>
    %43 = arith.mulf %40, %42 : vector<5x128xf32>
    %c0_18 = arith.constant 0 : index
    %c0_19 = arith.constant 0 : index
    %44 = vector.load %arg6[%c0_18, %c0_19] : memref<1x128xf32, #tpu.memory_space<vmem>>, vector<1x128xf32>
    %45 = vector.broadcast %44 : vector<1x128xf32> to vector<5x128xf32>
    %46 = arith.addf %43, %45 : vector<5x128xf32>
    %47 = tpu.iota {dimensions = array<i32: 0>} : vector<5x1xi32>
    %c0_i32 = arith.constant 0 : i32
    %48 = arith.cmpi eq, %arg0, %c0_i32 : i32
    %c0_i32_20 = arith.constant 0 : i32
    %49 = vector.broadcast %c0_i32_20 : i32 to vector<5x1xi32>
    %50 = arith.cmpi eq, %47, %49 : vector<5x1xi32>
    %51 = vector.broadcast %48 : i1 to vector<5x1xi1>
    %52 = arith.andi %51, %50 : vector<5x1xi1>
    %c0_21 = arith.constant 0 : index
    %c0_22 = arith.constant 0 : index
    %53 = vector.load %arg7[%c0_21, %c0_22] : memref<1x128xf32, #tpu.memory_space<vmem>>, vector<1x128xf32>
    %54 = vector.shape_cast %52 : vector<5x1xi1> to vector<5x1xi1>
    %55 = vector.broadcast %54 : vector<5x1xi1> to vector<5x128xi1>
    %56 = vector.shape_cast %53 : vector<1x128xf32> to vector<1x128xf32>
    %57 = vector.broadcast %56 : vector<1x128xf32> to vector<5x128xf32>
    %58 = arith.select %55, %57, %46 : vector<5x128xi1>, vector<5x128xf32>
    %c0_23 = arith.constant 0 : index
    %c0_24 = arith.constant 0 : index
    %59 = vector.load %arg8[%c0_23, %c0_24] : memref<5x128xf32, #tpu.memory_space<vmem>>, vector<5x128xf32>
    %60 = arith.addf %58, %59 : vector<5x128xf32>
    %c0_25 = arith.constant 0 : index
    %c0_26 = arith.constant 0 : index
    %c0_27 = arith.constant 0 : index
    %61 = vector.load %arg9[%c0_25, %c0_26, %c0_27] : memref<1x5x128xf32, #tpu.memory_space<vmem>>, vector<1x5x128xf32>
    %62 = vector.shape_cast %61 : vector<1x5x128xf32> to vector<5x128xf32>
    %63 = vector.shape_cast %60 : vector<5x128xf32> to vector<1x5x128xf32>
    tpu.vector_store %arg9[%c0_25, %c0_26, %c0_27], %63 {strides = array<i32>} : memref<1x5x128xf32, #tpu.memory_space<vmem>>, vector<1x5x128xf32>,
    return
  }
  func.func @transform_0(%arg0: i32, %arg1: i32) -> (i32, i32, i32) {
    %c0_i32 = arith.constant 0 : i32
    %c0_i32_0 = arith.constant 0 : i32
    return %arg1, %arg0, %c0_i32 : i32, i32, i32
  }
  func.func @transform_1(%arg0: i32, %arg1: i32) -> (i32, i32) {
    %c0_i32 = arith.constant 0 : i32
    %c0_i32_0 = arith.constant 0 : i32
    %c0_i32_1 = arith.constant 0 : i32
    return %c0_i32, %c0_i32_0 : i32, i32
  }
  func.func @transform_2(%arg0: i32, %arg1: i32) -> (i32, i32) {
    %c0_i32 = arith.constant 0 : i32
    %c0_i32_0 = arith.constant 0 : i32
    %c0_i32_1 = arith.constant 0 : i32
    return %c0_i32, %c0_i32_0 : i32, i32
  }
  func.func @transform_3(%arg0: i32, %arg1: i32) -> (i32, i32) {
    %c0_i32 = arith.constant 0 : i32
    %c0_i32_0 = arith.constant 0 : i32
    %c0_i32_1 = arith.constant 0 : i32
    return %c0_i32, %c0_i32_0 : i32, i32
  }
  func.func @transform_4(%arg0: i32, %arg1: i32) -> (i32, i32) {
    %c0_i32 = arith.constant 0 : i32
    %c0_i32_0 = arith.constant 0 : i32
    %c0_i32_1 = arith.constant 0 : i32
    return %c0_i32, %c0_i32_0 : i32, i32
  }
  func.func @transform_5(%arg0: i32, %arg1: i32) -> (i32, i32) {
    %c0_i32 = arith.constant 0 : i32
    %c0_i32_0 = arith.constant 0 : i32
    %c0_i32_1 = arith.constant 0 : i32
    return %c0_i32, %c0_i32_0 : i32, i32
  }
  func.func @transform_6(%arg0: i32, %arg1: i32) -> (i32, i32) {
    %c0_i32 = arith.constant 0 : i32
    %c0_i32_0 = arith.constant 0 : i32
    return %arg0, %c0_i32 : i32, i32
  }
  func.func @transform_7(%arg0: i32, %arg1: i32) -> (i32, i32, i32) {
    %c0_i32 = arith.constant 0 : i32
    %c0_i32_0 = arith.constant 0 : i32
    return %arg1, %arg0, %c0_i32 : i32, i32, i32
  }
}

</mosaic_0001>

<bundles_post_ra>
// kernel: encoder_forward.1
= control target key start
LH: loop header
LB: loop body
LE: loop exit
PB: predicated region body
PF: predicated region fallthrough
CT: control target
= control target key end

     0   :  { %s840_s24 = smov 0   ;;  %s842_s25 = smov 0   ;;  %s949_s0 = inlined_call_operand.vmem [shape: bf16[2,5,256], index: 0, kind: input, shape index: {}]   ;;  %s950_s1 = inlined_call_operand.vmem [shape: bf16[256,128], index: 1, kind: input, shape index: {}]   ;;  %s951_s2 = inlined_call_operand.vmem [shape: f32[1,128], index: 2, kind: input, shape index: {}]   ;;  %s952_s3 = inlined_call_operand.vmem [shape: f32[1,128], index: 3, kind: input, shape index: {}]   ;;  %s953_s4 = inlined_call_operand.vmem [shape: f32[1,128], index: 4, kind: input, shape index: {}]   ;;  %s954_s5 = inlined_call_operand.vmem [shape: f32[1,128], index: 5, kind: input, shape index: {}]   ;;  %s955_s6 = inlined_call_operand.vmem [shape: f32[5,128], index: 6, kind: input, shape index: {}]   ;;  %s956_s7 = inlined_call_operand.vmem [shape: f32[2,5,128], index: 7, kind: output, shape index: {}]  }
   0x1   :  { %s844_s26 = smov 0  }
   0x2 LB: > { %s26_s27 = sadd.s32 1, %s794_s25  ;;  %p683_p0 = scmp.ge.s32.totalorder %s798_s26, 1  ;;  %s798_s26 = sphi %s844_s26, %s17_s26   ;;  %s794_s25 = sphi %s842_s25, %s958_s25   ;;  %s790_s24 = sphi %s840_s24, %s957_s24  }
   0x3   : > { %p27_p1 = scmp.ge.s32.totalorder %s26_s27, 2  ;;  %p266_p2 = scmp.lt.s32.totalorder %s798_s26, 3 }
   0x5   : > { %s960_s27 = smov (%p27_p1, %s26_s27), 0  ;;  %p267_p3 = pnand %p683_p0, %p266_p2 }
   0x6   : > { %p308_p4 = scmp.lt.s32.totalorder (!%p267_p3), %s790_s24, 1  ;;  %vm332_vm0 = vcmask (!%p267_p3), 1044480   ;;  %v756_v6 = vld [vmem:[%s950_s1 + $0x40] sm:$0xff] (!%p267_p3)   ;;  %v758_v8 = vld [vmem:[%s950_s1 + $0x48] sm:$0xff] (!%p267_p3)   ;;  %v760_v10 = vld [vmem:[%s950_s1 + $0x50] sm:$0xff] (!%p267_p3)   ;;  %v561_v55 = vlaneseq (!%p267_p3) }
   0x7   : > { %270 = sbr.rel (%p267_p3) target bundleno = 870 (0x366), region = 48  ;;  %v757_v7 = vld [vmem:[%s950_s1] sm:$0xff] (!%p267_p3)   ;;  %710 = vmatprep.subr.bf16.mxu0 (!%p267_p3), %v756_v6  ;;  %v759_v9 = vld [vmem:[%s950_s1 + $0x8] sm:$0xff] (!%p267_p3)   ;;  %v761_v11 = vld [vmem:[%s950_s1 + $0x10] sm:$0xff] (!%p267_p3)  }
   0x8   : > { %711 = vmatpush3.bf16.msra.mxu0 (!%p267_p3), %v757_v7  ;;  %v762_v21 = vld [vmem:[%s950_s1 + $0x58] sm:$0xff] (!%p267_p3)   ;;  %v764_v23 = vld [vmem:[%s950_s1 + $0x60] sm:$0xff] (!%p267_p3)   ;;  %v766_v25 = vld [vmem:[%s950_s1 + $0x68] sm:$0xff] (!%p267_p3)   ;;  %v562_v58 = vshrl.u32 (!%p267_p3), %v561_v55, 7 }
   0x9   : > { %712 = vmatprep.subr.bf16.mxu0 (!%p267_p3), %v758_v8  ;;  %v763_v22 = vld [vmem:[%s950_s1 + $0x18] sm:$0xff] (!%p267_p3)   ;;  %v765_v24 = vld [vmem:[%s950_s1 + $0x20] sm:$0xff] (!%p267_p3)   ;;  %v767_v26 = vld [vmem:[%s950_s1 + $0x28] sm:$0xff] (!%p267_p3)  }
   0xa   : > { %v768_v27 = vld [vmem:[%s950_s1 + $0x70] sm:$0xff] (!%p267_p3)   ;;  %v770_v29 = vld [vmem:[%s950_s1 + $0x78] sm:$0xff] (!%p267_p3)   ;;  %v687_v41 = vld [vmem:[%s951_s2] ss:$0 sm:$0xff] (!%p267_p3)  ;;  %vm564_vm1 = vcmp.eq.s32.totalorder (!%p267_p3), %v562_v58, 0 }
   0xb   : > { %v769_v28 = vld [vmem:[%s950_s1 + $0x30] sm:$0xff] (!%p267_p3)   ;;  %v771_v30 = vld [vmem:[%s950_s1 + $0x38] sm:$0xff] (!%p267_p3)   ;;  %v704_v57 = vld [vmem:[%s952_s3] ss:$0 sm:$0xff] (!%p267_p3) }
   0xc   : > { %713 = vmatpush3.bf16.msra.mxu0 (!%p267_p3), %v759_v9  ;;  %v705_v60 = vld [vmem:[%s953_s4] ss:$0 sm:$0xff] (!%p267_p3) }
   0xd   : > { %714 = vmatprep.subr.bf16.mxu0 (!%p267_p3), %v760_v10  ;;  %v706_v62 = vld [vmem:[%s954_s5] ss:$0 sm:$0xff] (!%p267_p3) }
   0xe   : > { %s962_s24 = smov (!%p308_p4, %s790_s24), 1  ;;  %v579_v63 = vld [vmem:[%s955_s6] sm:$0x1f] }
   0xf   : > { %s709_s28 = sshll.u32 %s962_s24, 3 }
  0x10   : > { %s316_s8 = scalar_lea.vmem %s949_s0, %s709_s28  ;;  %715 = vmatpush3.bf16.msra.mxu0 %v761_v11  ;;  %s327_s17 = scalar_lea.vmem %s956_s7, %s709_s28 }
  0x11   : > { %v329_v0 = vld [vmem:[%s316_s8] sm:$0x77]  ;;  %716 = vmatprep.subr.bf16.mxu0 %v762_v21 }
  0x12   : > { %v330_v1 = vunpack.c.l.bf16 %v329_v0  ;;  %v331_v2 = vunpack.c.h.bf16 %v329_v0 }
  0x14   : > { %v333_v3 = vsel %vm332_vm0, %v330_v1, 0.0  ;;  %v334_v4 = vsel %vm332_vm0, %v331_v2, 0.0  ;;  %717 = vmatpush3.bf16.msra.mxu0 %v763_v22 }
  0x15   : > { %v335_v5 = vadd.f32 %v334_v4, %v333_v3  ;;  %718 = vmatprep.subr.bf16.mxu0 %v764_v23 }
  0x17   : > { %336 = vadd.xlane.f32.xlu0 %v335_v5 }
  0x18   : > { %719 = vmatpush3.bf16.msra.mxu0 %v765_v24 }
  0x19   : > { %720 = vmatprep.subr.bf16.mxu0 %v766_v25 }
  0x1c   : > { %721 = vmatpush3.bf16.msra.mxu0 %v767_v26 }
  0x1d   : > { %722 = vmatprep.subr.bf16.mxu0 %v768_v27 }
  0x20   : > { %723 = vmatpush3.bf16.msra.mxu0 %v769_v28 }
  0x21   : > { %724 = vmatprep.subr.bf16.mxu0 %v770_v29 }
  0x24   : > { %725 = vmatpush3.bf16.msra.mxu0 %v771_v30 }
  0xa4   : > { %v337_v12 = vpop.xlane.xlu0 %336 }
  0xa5   : > { %v339_v13 = vmul.f32 0.00390625, %v337_v12 }
  0xa7   : > { %v340_v14 = vsub.f32 %v330_v1, %v339_v13  ;;  %v341_v15 = vsub.f32 %v331_v2, %v339_v13 }
  0xa9   : > { %v342_v16 = vmul.f32 %v340_v14, %v340_v14  ;;  %v343_v17 = vmul.f32 %v341_v15, %v341_v15 }
  0xab   : > { %v344_v18 = vsel %vm332_vm0, %v342_v16, 0.0  ;;  %v345_v19 = vsel %vm332_vm0, %v343_v17, 0.0 }
  0xac   : > { %v346_v20 = vadd.f32 %v345_v19, %v344_v18 }
  0xae   : > { %347 = vadd.xlane.f32.xlu0 %v346_v20 }
 0x13b   : > { %v348_v31 = vpop.xlane.xlu0 %347 }
 0x13c   : > { %v349_v32 = vmul.f32 0.00390625, %v348_v31 }
 0x13e   : > { %v350_v33 = vadd.f32 1e-05, %v349_v32 }
 0x140   : > { %772 = vrsqrt.f32 %v350_v33 }
 0x14a   : > { %v773_v34 = vpop.eup %772 }
 0x14b   : > { %v353_v35 = vmul.f32 %v773_v34, %v341_v15  ;;  %v352_v36 = vmul.f32 %v773_v34, %v340_v14 }
 0x14d   : > { %v355_v37 = vpack.c.bf16 %v353_v35, %v353_v35  ;;  %v354_v38 = vpack.c.bf16 %v352_v36, %v352_v36 }
 0x14f   : > { %523 = vmatprep.mubr.bf16.mxu0 %v355_v37 }
 0x150   : > { %524 = vmatmul.mubr.bf16.vlgmr.msra.gmra.mrb[0].mxu0 %v354_v38 }
 0x223   : > { %v726_v39 = vpop.f32.mrb[0].mxu0 }
 0x224   : > { %v727_v40 = vpop.f32.mrb[1].mxu0 }
 0x225   : > { %v728_v42 = vadd.f32 %v727_v40, %v726_v39  ;;  %v729_v43 = vpop.f32.mrb[2].mxu0 }
 0x226   : > { %v730_v44 = vpop.f32.mrb[3].mxu0 }
 0x227   : > { %v526_v45 = vadd.f32 %v728_v42, %v687_v41 }
 0x229   : > { %v531_v46 = vsel %vm332_vm0, %v526_v45, 0.0 }
 0x22a   : > { %532 = vadd.xlane.f32.xlu1 %v531_v46 }
 0x2b7   : > { %v533_v47 = vpop.xlane.xlu1 %532 }
 0x2b8   : > { %v535_v48 = vmul.f32 0.0078125, %v533_v47 }
 0x2ba   : > { %v536_v49 = vsub.f32 %v526_v45, %v535_v48 }
 0x2bc   : > { %v537_v50 = vmul.f32 %v536_v49, %v536_v49 }
 0x2be   : > { %v538_v51 = vsel %vm332_vm0, %v537_v50, 0.0 }
 0x2bf   : > { %539 = vadd.xlane.f32.xlu1 %v538_v51 }
 0x34c   : > { %v540_v52 = vpop.xlane.xlu1 %539 }
 0x34d   : > { %v541_v53 = vmul.f32 0.0078125, %v540_v52 }
 0x34f   : > { %v542_v54 = vadd.f32 1e-05, %v541_v53 }
 0x351   : > { %774 = vrsqrt.f32 %v542_v54 }
 0x35b   : > { %v775_v56 = vpop.eup %774 }
 0x35c   : > { %v544_v59 = vmul.f32 %v775_v56, %v536_v49 }
 0x35e   : > { %v552_v61 = vmul.f32 %v704_v57, %v544_v59 }
 0x360   : > { %v560_v0 = vadd.f32 %v705_v60, %v552_v61 }
 0x362   : > { %v578_v1 = vsel %vm564_vm1, %v706_v62, %v560_v0 }
 0x363   : > { %v580_v2 = vadd.f32 %v579_v63, %v578_v1 }
 0x365   : > { %581 = vst [vmem:[%s327_s17] sm:$0x1f] %v580_v2 }
 0x366 PF: > { %s17_s26 = sadd.s32 1, %s798_s26   ;;  %s957_s24 = smov %s794_s25 }
 0x367   : > { %p14_p5 = scmp.ge.s32.totalorder %s17_s26, 4   ;;  %s958_s25 = smov %s960_s27 }
 0x369   :  { %16 = sbr.rel (!%p14_p5) target bundleno = 2 (0x2), region = 81 }

</bundles_post_ra>
